<compile_context>
chip_gen: v6e
topology: v6e:2x2x1
jax: 0.10.0
libtpu: 0.0.40
codegen_flags: <defaults>
</compile_context>

<pallas_src>
import jax
import jax.numpy as jnp
from jax.experimental import pallas as pl
from jax.experimental.pallas import tpu as pltpu


# ---------------------------------------------------------------------------
# Kernels
# ---------------------------------------------------------------------------

def _unchunk_rows_kernel(x_ref, o_ref):
    """x_ref: (n_sections, tS, lane) -> o_ref: (tS, n_sections * lane).

    Static, lane-tile-aligned slices (used only when lane % 128 == 0), so
    every store is an unmasked, contiguous vst.
    """
    n_sections, _, lane = x_ref.shape
    for i in range(n_sections):
        o_ref[:, i * lane:(i + 1) * lane] = x_ref[i]


def _unchunk_sections_kernel(x_ref, o_ref):
    """x_ref: (n_sections, tS, lane) -> o_ref: (tS, n_sections, lane).

    Used when lane % 128 != 0: writes a full (tS, lane) slab per section via a
    static second-to-last (sublane-side) index, avoiding unaligned lane-offset
    stores.  The wrapper reshapes (S, n_sections, lane) -> (S, n_sections*B, D)
    for free (same flat layout).
    """
    n_sections = x_ref.shape[0]
    for i in range(n_sections):
        o_ref[:, i, :] = x_ref[i]


# ---------------------------------------------------------------------------
# Tiling helpers
# ---------------------------------------------------------------------------

def _sublane_multiple(itemsize: int) -> int:
    # f32 -> 8, bf16 -> 16, int8/fp8 -> 32 (sublane packing of narrow dtypes).
    return 8 * max(1, 4 // itemsize)


def _default_target_block_bytes() -> int:
    """~4-8 MiB per block, sized off the chip's VMEM when discoverable."""
    try:
        vmem = getattr(pltpu.get_tpu_info(), "vmem_capacity_bytes", 64 << 20)
    except Exception:  # pragma: no cover - conservative fallback off-device
        vmem = 64 << 20
    # ~4 buffers resident (double-buffered in + out); stay well under VMEM.
    return int(min(8 << 20, max(2 << 20, vmem // 8)))


def _pick_seq_tile(S: int, sub: int, row_bytes: int, target_bytes: int) -> int:
    """Rows per seq block: a sublane multiple targeting `target_bytes`.

    Does NOT require dividing S (ragged tail blocks are masked by Pallas);
    if S itself is small the full extent S is used, which is always legal.
    """
    max_rows = max(1, target_bytes // max(row_bytes, 1))
    tS = (max_rows // sub) * sub
    if tS < sub:
        tS = sub
    if tS >= S:
        return S
    return tS


# ---------------------------------------------------------------------------
# Wrapper
# ---------------------------------------------------------------------------

def unchunk(x: jax.Array, n_sections: int = 2,
            target_block_bytes: int | None = None) -> jax.Array:
    """Pallas equivalent of Unchunk(n_sections, dim=-3).forward(x) for 3-D x."""
    assert x.ndim == 3, "kernel implemented for 3-D inputs (N, B, D)"
    N, B, D = x.shape
    assert N % n_sections == 0, "x.shape[0] must be divisible by n_sections"

    if n_sections == 1:
        # Identity: skip the kernel (saves a full HBM read + write).
        return x

    S = N // n_sections
    lane = B * D
    itemsize = jnp.dtype(x.dtype).itemsize
    sub = _sublane_multiple(itemsize)
    if target_block_bytes is None:
        target_block_bytes = _default_target_block_bytes()

    # One block (input or output) holds n_sections * tS * lane elements.
    row_bytes = n_sections * lane * itemsize
    tS = _pick_seq_tile(S, sub, row_bytes, target_block_bytes)
    n_s = pl.cdiv(S, tS)
    if n_s == 1 and S > sub:
        # Ensure >= 2 parallel grid steps so both v7x TensorCores get work.
        half = -(-((S + 1) // 2) // sub) * sub
        if half < S:
            tS = half
            n_s = pl.cdiv(S, tS)

    block_bytes = n_sections * tS * lane * itemsize
    vmem_limit = int(min(48 << 20, max(24 << 20, 4 * block_bytes + (4 << 20))))
    cparams = pltpu.CompilerParams(
        dimension_semantics=("parallel",),
        vmem_limit_bytes=vmem_limit)
    cost = pl.CostEstimate(flops=0, transcendentals=0,
                           bytes_accessed=2 * x.size * itemsize)

    x3 = x.reshape(n_sections, S, lane)
    in_spec = pl.BlockSpec((n_sections, tS, lane), lambda s: (0, s, 0))

    if lane % 128 == 0:
        # Fast path: lane-dense 2-D output slab, full-row output blocks.
        out2 = pl.pallas_call(
            _unchunk_rows_kernel,
            out_shape=jax.ShapeDtypeStruct((S, n_sections * lane), x.dtype),
            grid=(n_s,),
            in_specs=[in_spec],
            out_specs=pl.BlockSpec((tS, n_sections * lane), lambda s: (s, 0)),
            compiler_params=cparams,
            cost_estimate=cost,
        )(x3)
        return out2.reshape(S, n_sections * B, D)

    # Compat path (lane not a multiple of 128): 3-D output, static sublane
    # index per section; trailing dims equal full array extents so lowering is
    # always legal.  Final reshape is layout-free.
    out3 = pl.pallas_call(
        _unchunk_sections_kernel,
        out_shape=jax.ShapeDtypeStruct((S, n_sections, lane), x.dtype),
        grid=(n_s,),
        in_specs=[in_spec],
        out_specs=pl.BlockSpec((tS, n_sections, lane), lambda s: (s, 0, 0)),
        compiler_params=cparams,
        cost_estimate=cost,
    )(x3)
    return out3.reshape(S, n_sections * B, D)


def unchunk_ref(x: jax.Array, n_sections: int = 2) -> jax.Array:
    """Pure-JAX reference mirroring torch.cat(torch.chunk(x, n, dim=-3), dim=-2)."""
    chunks = jnp.split(x, n_sections, axis=-3)
    return jnp.concatenate(chunks, axis=-2)


if __name__ == "__main__":
    key = jax.random.PRNGKey(0)

    # Case 1: f32, lane-dense fast path. N=16 -> S=8, B*D=128, single block.
    x1 = jax.random.normal(key, (16, 4, 32), dtype=jnp.float32)
    o1 = jax.block_until_ready(unchunk(x1, n_sections=2))
    r1 = unchunk_ref(x1, n_sections=2)
    assert o1.shape == r1.shape == (8, 8, 32), (o1.shape, r1.shape)
    assert o1.dtype == r1.dtype
    assert jnp.array_equal(o1, r1), "fast path (f32) mismatch vs reference"

    # Case 2: bf16, n_sections=4, wide lane (B*D=1024); exercises the
    # two-step megacore split of the seq axis.
    x2 = jax.random.normal(jax.random.fold_in(key, 1), (128, 16, 64),
                           dtype=jnp.bfloat16)
    o2 = jax.block_until_ready(unchunk(x2, n_sections=4))
    r2 = unchunk_ref(x2, n_sections=4)
    assert o2.shape == r2.shape == (32, 64, 64), (o2.shape, r2.shape)
    assert jnp.array_equal(o2, r2), "fast path (bf16) mismatch vs reference"

    # Case 3: compat path (B*D=192 not a multiple of 128, S=4 < sublane).
    x3 = jax.random.normal(jax.random.fold_in(key, 2), (8, 8, 24),
                           dtype=jnp.float32)
    o3 = jax.block_until_ready(unchunk(x3, n_sections=2))
    r3 = unchunk_ref(x3, n_sections=2)
    assert o3.shape == r3.shape == (4, 16, 24), (o3.shape, r3.shape)
    assert jnp.array_equal(o3, r3), "compat path mismatch vs reference"

    # Case 4: ragged tail blocks via cdiv (S=20, tS=8 -> 3 steps, last masked).
    x4 = jax.random.normal(jax.random.fold_in(key, 3), (40, 4, 32),
                           dtype=jnp.float32)
    o4 = jax.block_until_ready(unchunk(x4, n_sections=2,
                                       target_block_bytes=8192))
    r4 = unchunk_ref(x4, n_sections=2)
    assert o4.shape == r4.shape == (20, 8, 32), (o4.shape, r4.shape)
    assert jnp.array_equal(o4, r4), "ragged-tail path mismatch vs reference"

    # Case 5: n_sections == 1 is the identity (no kernel launch).
    o5 = jax.block_until_ready(unchunk(x1, n_sections=1))
    assert o5.shape == x1.shape and jnp.array_equal(o5, x1), "identity mismatch"

    print("KERNEL_OK")
</pallas_src>

<mosaic_0001>
module attributes {stable_mosaic.version = 11 : i64} {
  func.func @_unchunk_rows_kernel(%arg0: i32, %arg1: memref<2x8x128xf32, #tpu.memory_space<vmem>>, %arg2: memref<8x256xf32, #tpu.memory_space<vmem>>) attributes {dimension_semantics = [#tpu.dimension_semantics<parallel>], iteration_bounds = array<i64: 1>, scalar_prefetch = 0 : i64, scratch_operands = 0 : i64, tpu.core_type = #tpu.core_type<tc>, window_params = [{transform_indices = @transform_0, window_bounds = array<i64: 2, 8, 128>}, {transform_indices = @transform_1, window_bounds = array<i64: 8, 256>}]} {
    %c0 = arith.constant 0 : index
    %c0_0 = arith.constant 0 : index
    %c0_1 = arith.constant 0 : index
    %0 = vector.load %arg1[%c0, %c0_0, %c0_1] : memref<2x8x128xf32, #tpu.memory_space<vmem>>, vector<1x8x128xf32>
    %1 = vector.shape_cast %0 : vector<1x8x128xf32> to vector<8x128xf32>
    %c0_2 = arith.constant 0 : index
    %c0_3 = arith.constant 0 : index
    %2 = vector.load %arg2[%c0_2, %c0_3] : memref<8x256xf32, #tpu.memory_space<vmem>>, vector<8x128xf32>
    tpu.vector_store %arg2[%c0_2, %c0_3], %1 {strides = array<i32>} : memref<8x256xf32, #tpu.memory_space<vmem>>, vector<8x128xf32>,
    %c1 = arith.constant 1 : index
    %c0_4 = arith.constant 0 : index
    %c0_5 = arith.constant 0 : index
    %3 = vector.load %arg1[%c1, %c0_4, %c0_5] : memref<2x8x128xf32, #tpu.memory_space<vmem>>, vector<1x8x128xf32>
    %4 = vector.shape_cast %3 : vector<1x8x128xf32> to vector<8x128xf32>
    %c0_6 = arith.constant 0 : index
    %c128 = arith.constant 128 : index
    %5 = vector.load %arg2[%c0_6, %c128] : memref<8x256xf32, #tpu.memory_space<vmem>>, vector<8x128xf32>
    tpu.vector_store %arg2[%c0_6, %c128], %4 {strides = array<i32>} : memref<8x256xf32, #tpu.memory_space<vmem>>, vector<8x128xf32>,
    return
  }
  func.func @transform_0(%arg0: i32) -> (i32, i32, i32) {
    %c0_i32 = arith.constant 0 : i32
    %c0_i32_0 = arith.constant 0 : i32
    %c0_i32_1 = arith.constant 0 : i32
    return %c0_i32, %arg0, %c0_i32_0 : i32, i32, i32
  }
  func.func @transform_1(%arg0: i32) -> (i32, i32) {
    %c0_i32 = arith.constant 0 : i32
    %c0_i32_0 = arith.constant 0 : i32
    return %arg0, %c0_i32 : i32, i32
  }
}

</mosaic_0001>

<bundles_post_ra>
// kernel: tpu_custom_call.1
= control target key start
LH: loop header
LB: loop body
LE: loop exit
PB: predicated region body
PF: predicated region fallthrough
CT: control target
= control target key end

     0   :  { %6 = vsyncpa [#allocation3], 0  ;;  %s111_s0 = inlined_call_operand.hbm [shape: f32[2,8,128], index: 0, kind: input, shape index: {}]   ;;  %s112_s1 = inlined_call_operand.hbm [shape: f32[8,256], index: 1, kind: output, shape index: {}]  }
   0x1   :  { %7 = vsyncpa [#allocation4], 0  ;;  %s91_s6 = smov [#allocation2]  }
   0x2   :  { %s13_s7 = sshll.u32 %s91_s6, 4  ;;  %s14_s7 = int_to_ptr.vmem [resolvable:$true] %s13_s7 }
   0x3   :  { %s55_s8 = scalar_lea.vmem %s14_s7, 256  ;;  %p60_p1 = scmp.lt.s32.totalorder %s14_s7, %s14_s7 }
   0x4   :  { %p56_p0 = scmp.ne.s32.totalorder %s14_s7, %s55_s8  ;;  %p61_p2 = scmp.lt.s32.totalorder %s55_s8, %s55_s8 }
   0x6   :  { %p62_p3 = por %p61_p2, %p60_p1 }
   0x8   :  { %p63_p4 = pnand %p62_p3, %p56_p0 }
   0xa   :  { %66 = shalt.err (!%p63_p4)
}
   0xb   :  { %s92_s9 = smov 128   ;;  %s93_s10 = smov 8  }
   0xc   :  { %19 = dma.hbm_to_vmem [thread:$0]  %s111_s0, 256, %s14_s7, [#allocation3], %s92_s9, %s92_s9, %s93_s10  }
   0xd   :  { %87 = dma.done.wait [#allocation3], 256  }
   0xe   :  { %88 = vsyncadd [#allocation3], 4294967040  ;;  %s94_s13 = smov [#allocation5]   ;;  %v23_v0 = vld [vmem:[#allocation2] sm:$0xff]  ;;  %v26_v1 = vld [vmem:[#allocation2 + $0x8] sm:$0xff] }
   0xf   :  { %s34_s14 = sshll.u32 %s94_s13, 4  ;;  %24 = vst [vmem:[#allocation5] sm:$0xff] %v23_v0  ;;  %27 = vst [vmem:[#allocation5 + $0x8] sm:$0xff] %v26_v1  ;;  %s35_s14 = int_to_ptr.vmem [resolvable:$true] %s34_s14 }
  0x10   :  { %s67_s15 = scalar_lea.vmem %s35_s14, 256  ;;  %p72_p6 = scmp.lt.s32.totalorder %s35_s14, %s35_s14 }
  0x11   :  { %p68_p5 = scmp.ne.s32.totalorder %s35_s14, %s67_s15  ;;  %p73_p7 = scmp.lt.s32.totalorder %s67_s15, %s67_s15 }
  0x13   :  { %p74_p8 = por %p73_p7, %p72_p6 }
  0x15   :  { %p75_p9 = pnand %p74_p8, %p68_p5 }
  0x17   :  { %78 = shalt.err (!%p75_p9)
}
  0x18   :  { %37 = dma.vmem_to_hbm [thread:$0]  %s35_s14, 256, %s112_s1, [#allocation4]  }
  0x19   :  { %89 = dma.done.wait [#allocation4], 256  }
  0x1a   :  { %90 = vsyncadd [#allocation4], 4294967040 }
  0x1b   :  { %41 = vsyncpa [#allocation3], 1 }
  0x1c   :  { %42 = vsyncpa [#allocation4], 1 }

</bundles_post_ra>
